<compile_context>
chip_gen: v5e
topology: v5e:2x2
jax: 0.10.0
libtpu: 0.0.40
codegen_flags: <defaults>
</compile_context>

<pallas_src>
import functools

import jax
import jax.numpy as jnp
from jax import lax
from jax.experimental import pallas as pl
from jax.experimental.pallas import tpu as pltpu

_LANE = 128


def _tpu_vmem_bytes(default=64 << 20):
    """Best-effort physical VMEM capacity (falls back to 64 MiB, safe on all gens)."""
    try:
        info = pltpu.get_tpu_info()
        for attr in ("vmem_capacity_bytes", "vmem_bytes", "vmem_size_bytes"):
            val = getattr(info, attr, None)
            if val:
                return int(val)
    except Exception:
        pass
    return default


def _mlp_kernel(x_ref, w1_ref, b1_ref, w2_ref, b2_ref, w3_ref, b3_ref, o_ref, *, chunk):
    """x_ref: (TB, D) natural layout; o_ref: (1, TB) batch-on-lanes output row."""
    w1 = w1_ref[...]          # (H1, D)
    w2 = w2_ref[...]          # (H2, H1)
    w3 = w3_ref[...]          # (1, H2)
    h1_rows = w1.shape[0]
    h2_rows = w2.shape[0]
    # Hoist bias broadcasts out of the chunk loop (JAX does not CSE broadcast_in_dim).
    b1 = jnp.broadcast_to(b1_ref[...], (h1_rows, chunk))
    b2 = jnp.broadcast_to(b2_ref[...], (h2_rows, chunk))
    b3 = jnp.broadcast_to(b3_ref[...], (1, chunk))

    n_chunks = x_ref.shape[0] // chunk

    def compute_chunk(start):
        xb = x_ref[pl.ds(start, chunk), :]                              # (C, D)
        # Layer 1: transpose folded into the contraction -> (H1, C), batch on lanes.
        h1 = lax.dot_general(w1, xb, (((1,), (1,)), ((), ())),
                             preferred_element_type=jnp.float32)
        h1 = jnp.maximum(h1 + b1, 0.0)
        # Layer 2: (H2, H1) @ (H1, C) -> (H2, C)
        h2 = jnp.dot(w2, h1, preferred_element_type=jnp.float32)
        h2 = jnp.maximum(h2 + b2, 0.0)
        # Layer 3 on the (idle) MXU: (1, H2) @ (H2, C) -> (1, C)
        out = jnp.dot(w3, h2, preferred_element_type=jnp.float32) + b3
        o_ref[:, pl.ds(start, chunk)] = out.astype(o_ref.dtype)

    if n_chunks <= 8:
        # Static unroll with static slice starts: full LLO scheduler visibility.
        for c in range(n_chunks):
            compute_chunk(c * chunk)
    else:
        def body(c, carry):
            compute_chunk(pl.multiple_of(c * chunk, chunk))
            return carry

        lax.fori_loop(0, n_chunks, body, 0)


def nn_heuristic_simple(x, params, *, tile_b=None):
    """Forward pass of NNHeuristicSimple.

    x: (B, input_dims) float32
    params: PyTorch-layout weights: w1 (32, D), b1 (32,), w2 (32, 32), b2 (32,),
            w3 (1, 32), b3 (1,)
    returns: (B, 1) float32
    """
    B, D = x.shape
    w1 = jnp.asarray(params["w1"], jnp.float32)                    # (H1, D)
    w2 = jnp.asarray(params["w2"], jnp.float32)                    # (H2, H1)
    w3 = jnp.asarray(params["w3"], jnp.float32).reshape(1, -1)     # (1, H2)
    H1, H2 = w1.shape[0], w2.shape[0]
    b1 = jnp.asarray(params["b1"], jnp.float32).reshape(H1, 1)
    b2 = jnp.asarray(params["b2"], jnp.float32).reshape(H2, 1)
    b3 = jnp.asarray(params["b3"], jnp.float32).reshape(1, 1)

    B_ceil = pl.cdiv(B, _LANE) * _LANE          # lane-aligned width (never materialized)
    vmem_cap = _tpu_vmem_bytes()

    if tile_b is None:
        # Big tiles amortize the ~0.35us per-grid-step overhead.  The (TB, 6) x block
        # is lane-padded to 128 in VMEM (512 B/column double-buffered), so cap by the
        # chip's VMEM: v5e/v6e (128 MiB) -> 32K columns, v7x (64 MiB) -> 16K columns.
        tile_b = 32768 if vmem_cap >= (96 << 20) else 16384
    tile_b = max(_LANE, (int(tile_b) // _LANE) * _LANE)
    tile_b = min(tile_b, B_ceil)

    # Guarantee >= 2 grid steps on big batches so v7x's second TensorCore is used
    # (costs at most one extra ~0.35us step on single-TC chips).
    if pl.cdiv(B, tile_b) == 1 and tile_b >= 4096:
        tile_b = ((tile_b // 2 + _LANE - 1) // _LANE) * _LANE

    num_blocks = pl.cdiv(B, tile_b)
    if num_blocks == 1:
        # Single block: size it exactly to B so no block is out of bounds at all.
        tile_b = B

    if tile_b % _LANE == 0:
        chunk = 512
        while tile_b % chunk:
            chunk //= 2
    else:
        chunk = tile_b      # ragged single block: one full-width chunk, static indices

    # VMEM budget: double-buffered lane-padded x block + double-buffered out row + slack.
    need = tile_b * (2 * _LANE * 4 + 2 * 8 * 4) + (8 << 20)
    vmem_limit = int(min(vmem_cap, max(32 << 20, need)))

    weight_bytes = 4 * (w1.size + b1.size + w2.size + b2.size + w3.size + b3.size)
    cost = pl.CostEstimate(
        flops=2 * B * (D * H1 + H1 * H2 + H2),
        transcendentals=0,
        bytes_accessed=int(B * (D + 1) * 4 + weight_bytes),
    )

    # Weights/biases are tiny and use a constant index_map, so they are DMA'd once
    # and stay resident in VMEM across the grid.
    rep = lambda shape: pl.BlockSpec(shape, lambda i: (0, 0))

    out_row = pl.pallas_call(
        functools.partial(_mlp_kernel, chunk=chunk),
        out_shape=jax.ShapeDtypeStruct((1, B), jnp.float32),
        grid_spec=pltpu.PrefetchScalarGridSpec(
            num_scalar_prefetch=0,
            grid=(num_blocks,),
            in_specs=[
                pl.BlockSpec((tile_b, D), lambda i: (i, 0)),   # x in natural layout
                rep((H1, D)),                                  # w1
                rep((H1, 1)),                                  # b1
                rep((H2, H1)),                                 # w2
                rep((H2, 1)),                                  # b2
                rep((1, H2)),                                  # w3 (row)
                rep((1, 1)),                                   # b3
            ],
            out_specs=pl.BlockSpec((1, tile_b), lambda i: (0, i)),
        ),
        compiler_params=pltpu.CompilerParams(
            dimension_semantics=("parallel",),
            vmem_limit_bytes=vmem_limit,
        ),
        cost_estimate=cost,
    )(x.astype(jnp.float32), w1, b1, w2, b2, w3, b3)

    # (1, B) -> (B, 1): contiguous reshape (same element order), no transpose copy.
    return out_row.reshape(B, 1)


def init_params(key, input_dims=6):
    """Xavier-uniform-ish init in PyTorch layout: weight (out, in), bias (out,)."""
    k1, k2, k3, k4, k5, k6 = jax.random.split(key, 6)

    def xavier(k, fan_in, fan_out):
        limit = jnp.sqrt(6.0 / (fan_in + fan_out))
        return jax.random.uniform(k, (fan_out, fan_in), jnp.float32, -limit, limit)

    return {
        "w1": xavier(k1, input_dims, 32),                                  # (32, D)
        "b1": jax.random.uniform(k4, (32,), jnp.float32, -0.1, 0.1),
        "w2": xavier(k2, 32, 32),                                          # (32, 32)
        "b2": jax.random.uniform(k5, (32,), jnp.float32, -0.1, 0.1),
        "w3": xavier(k3, 32, 1),                                           # (1, 32)
        "b3": jax.random.uniform(k6, (1,), jnp.float32, -0.1, 0.1),
    }


def reference_forward(x, params):
    h1 = jnp.maximum(x @ params["w1"].T + params["b1"], 0.0)
    h2 = jnp.maximum(h1 @ params["w2"].T + params["b2"], 0.0)
    return h2 @ params["w3"].T + params["b3"]


if __name__ == "__main__":
    key = jax.random.PRNGKey(0)
    kx1, kx2, kx3, kp = jax.random.split(key, 4)

    input_dims = 6
    params = init_params(kp, input_dims=input_dims)

    # 1) Tiny batch -> single exact-size block (no OOB, no padding).
    x1 = jax.random.normal(kx1, (8, input_dims), jnp.float32)
    o1 = jax.block_until_ready(nn_heuristic_simple(x1, params))
    r1 = reference_forward(x1, params)
    assert o1.shape == (8, 1), o1.shape
    assert jnp.allclose(o1, r1, atol=1e-4, rtol=1e-4), (o1, r1)

    # 2) Ragged batch with a small explicit tile -> multi-block grid, partial last block.
    x2 = jax.random.normal(kx2, (200, input_dims), jnp.float32)
    o2 = jax.block_until_ready(nn_heuristic_simple(x2, params, tile_b=128))
    r2 = reference_forward(x2, params)
    assert o2.shape == (200, 1), o2.shape
    assert jnp.allclose(o2, r2, atol=1e-4, rtol=1e-4), (o2, r2)

    # 3) Batch exercising the in-kernel 512-column strip-mining loop.
    x3 = jax.random.normal(kx3, (1536, input_dims), jnp.float32)
    o3 = jax.block_until_ready(nn_heuristic_simple(x3, params))
    r3 = reference_forward(x3, params)
    assert o3.shape == (1536, 1), o3.shape
    assert jnp.allclose(o3, r3, atol=1e-4, rtol=1e-4), (o3, r3)

    print("KERNEL_OK")
</pallas_src>

<mosaic_0001>
module attributes {stable_mosaic.version = 11 : i64} {
  func.func @_mlp_kernel(%arg0: i32, %arg1: memref<8x6xf32, #tpu.memory_space<vmem>>, %arg2: memref<32x6xf32, #tpu.memory_space<vmem>>, %arg3: memref<32x1xf32, #tpu.memory_space<vmem>>, %arg4: memref<32x32xf32, #tpu.memory_space<vmem>>, %arg5: memref<32x1xf32, #tpu.memory_space<vmem>>, %arg6: memref<1x32xf32, #tpu.memory_space<vmem>>, %arg7: memref<1x1xf32, #tpu.memory_space<vmem>>, %arg8: memref<1x8xf32, #tpu.memory_space<vmem>>) attributes {dimension_semantics = [#tpu.dimension_semantics<parallel>], iteration_bounds = array<i64: 1>, scalar_prefetch = 0 : i64, scratch_operands = 0 : i64, tpu.core_type = #tpu.core_type<tc>, window_params = [{transform_indices = @transform_0, window_bounds = array<i64: 8, 6>}, {pipeline_mode = #tpu.pipeline_mode<synchronous>, transform_indices = @transform_1, window_bounds = array<i64: 32, 6>}, {pipeline_mode = #tpu.pipeline_mode<synchronous>, transform_indices = @transform_2, window_bounds = array<i64: 32, 1>}, {pipeline_mode = #tpu.pipeline_mode<synchronous>, transform_indices = @transform_3, window_bounds = array<i64: 32, 32>}, {pipeline_mode = #tpu.pipeline_mode<synchronous>, transform_indices = @transform_4, window_bounds = array<i64: 32, 1>}, {pipeline_mode = #tpu.pipeline_mode<synchronous>, transform_indices = @transform_5, window_bounds = array<i64: 1, 32>}, {pipeline_mode = #tpu.pipeline_mode<synchronous>, transform_indices = @transform_6, window_bounds = array<i64: 1, 1>}, {transform_indices = @transform_7, window_bounds = array<i64: 1, 8>}]} {
    %c0 = arith.constant 0 : index
    %c0_0 = arith.constant 0 : index
    %0 = vector.load %arg2[%c0, %c0_0] : memref<32x6xf32, #tpu.memory_space<vmem>>, vector<32x6xf32>
    %c0_1 = arith.constant 0 : index
    %c0_2 = arith.constant 0 : index
    %1 = vector.load %arg4[%c0_1, %c0_2] : memref<32x32xf32, #tpu.memory_space<vmem>>, vector<32x32xf32>
    %c0_3 = arith.constant 0 : index
    %c0_4 = arith.constant 0 : index
    %2 = vector.load %arg6[%c0_3, %c0_4] : memref<1x32xf32, #tpu.memory_space<vmem>>, vector<1x32xf32>
    %c0_5 = arith.constant 0 : index
    %c0_6 = arith.constant 0 : index
    %3 = vector.load %arg3[%c0_5, %c0_6] : memref<32x1xf32, #tpu.memory_space<vmem>>, vector<32x1xf32>
    %4 = vector.shape_cast %3 : vector<32x1xf32> to vector<32x1xf32>
    %5 = vector.broadcast %4 : vector<32x1xf32> to vector<32x8xf32>
    %c0_7 = arith.constant 0 : index
    %c0_8 = arith.constant 0 : index
    %6 = vector.load %arg5[%c0_7, %c0_8] : memref<32x1xf32, #tpu.memory_space<vmem>>, vector<32x1xf32>
    %7 = vector.shape_cast %6 : vector<32x1xf32> to vector<32x1xf32>
    %8 = vector.broadcast %7 : vector<32x1xf32> to vector<32x8xf32>
    %c0_9 = arith.constant 0 : index
    %c0_10 = arith.constant 0 : index
    %9 = vector.load %arg7[%c0_9, %c0_10] : memref<1x1xf32, #tpu.memory_space<vmem>>, vector<1x1xf32>
    %10 = vector.shape_cast %9 : vector<1x1xf32> to vector<1x1xf32>
    %11 = vector.broadcast %10 : vector<1x1xf32> to vector<1x8xf32>
    %c0_11 = arith.constant 0 : index
    %c0_12 = arith.constant 0 : index
    %12 = vector.load %arg1[%c0_11, %c0_12] : memref<8x6xf32, #tpu.memory_space<vmem>>, vector<8x6xf32>
    %cst = arith.constant dense<0.000000e+00> : vector<32x8xf32>
    %13 = tpu.matmul %0, %12, %cst {dimension_numbers = #tpu.dot_dimension_numbers<[1], [1], [0], [0], [0, 0, 1, 0], [], []>} : vector<32x6xf32>, vector<8x6xf32>, vector<32x8xf32> -> vector<32x8xf32>
    %14 = arith.addf %13, %5 : vector<32x8xf32>
    %cst_13 = arith.constant 0.000000e+00 : f32
    %15 = vector.broadcast %cst_13 : f32 to vector<32x8xf32>
    %16 = arith.maximumf %14, %15 : vector<32x8xf32>
    %cst_14 = arith.constant dense<0.000000e+00> : vector<32x8xf32>
    %17 = tpu.matmul %1, %16, %cst_14 {dimension_numbers = #tpu.dot_dimension_numbers<[1], [0], [0], [1], [0, 0, 1, 1], [], []>} : vector<32x32xf32>, vector<32x8xf32>, vector<32x8xf32> -> vector<32x8xf32>
    %18 = arith.addf %17, %8 : vector<32x8xf32>
    %cst_15 = arith.constant 0.000000e+00 : f32
    %19 = vector.broadcast %cst_15 : f32 to vector<32x8xf32>
    %20 = arith.maximumf %18, %19 : vector<32x8xf32>
    %cst_16 = arith.constant dense<0.000000e+00> : vector<1x8xf32>
    %21 = tpu.matmul %2, %20, %cst_16 {dimension_numbers = #tpu.dot_dimension_numbers<[1], [0], [0], [1], [0, 0, 1, 1], [], []>} : vector<1x32xf32>, vector<32x8xf32>, vector<1x8xf32> -> vector<1x8xf32>
    %22 = arith.addf %21, %11 : vector<1x8xf32>
    %c0_17 = arith.constant 0 : index
    %c0_18 = arith.constant 0 : index
    %23 = vector.load %arg8[%c0_17, %c0_18] : memref<1x8xf32, #tpu.memory_space<vmem>>, vector<1x8xf32>
    tpu.vector_store %arg8[%c0_17, %c0_18], %22 {strides = array<i32>} : memref<1x8xf32, #tpu.memory_space<vmem>>, vector<1x8xf32>,
    return
  }
  func.func @transform_0(%arg0: i32) -> (i32, i32) {
    %c0_i32 = arith.constant 0 : i32
    %c0_i32_0 = arith.constant 0 : i32
    return %arg0, %c0_i32 : i32, i32
  }
  func.func @transform_1(%arg0: i32) -> (i32, i32) {
    %c0_i32 = arith.constant 0 : i32
    %c0_i32_0 = arith.constant 0 : i32
    %c0_i32_1 = arith.constant 0 : i32
    return %c0_i32, %c0_i32_0 : i32, i32
  }
  func.func @transform_2(%arg0: i32) -> (i32, i32) {
    %c0_i32 = arith.constant 0 : i32
    %c0_i32_0 = arith.constant 0 : i32
    %c0_i32_1 = arith.constant 0 : i32
    return %c0_i32, %c0_i32_0 : i32, i32
  }
  func.func @transform_3(%arg0: i32) -> (i32, i32) {
    %c0_i32 = arith.constant 0 : i32
    %c0_i32_0 = arith.constant 0 : i32
    %c0_i32_1 = arith.constant 0 : i32
    return %c0_i32, %c0_i32_0 : i32, i32
  }
  func.func @transform_4(%arg0: i32) -> (i32, i32) {
    %c0_i32 = arith.constant 0 : i32
    %c0_i32_0 = arith.constant 0 : i32
    %c0_i32_1 = arith.constant 0 : i32
    return %c0_i32, %c0_i32_0 : i32, i32
  }
  func.func @transform_5(%arg0: i32) -> (i32, i32) {
    %c0_i32 = arith.constant 0 : i32
    %c0_i32_0 = arith.constant 0 : i32
    %c0_i32_1 = arith.constant 0 : i32
    return %c0_i32, %c0_i32_0 : i32, i32
  }
  func.func @transform_6(%arg0: i32) -> (i32, i32) {
    %c0_i32 = arith.constant 0 : i32
    %c0_i32_0 = arith.constant 0 : i32
    %c0_i32_1 = arith.constant 0 : i32
    return %c0_i32, %c0_i32_0 : i32, i32
  }
  func.func @transform_7(%arg0: i32) -> (i32, i32) {
    %c0_i32 = arith.constant 0 : i32
    %c0_i32_0 = arith.constant 0 : i32
    return %c0_i32, %arg0 : i32, i32
  }
}

</mosaic_0001>

<bundles_post_ra>
// kernel: tpu_custom_call.1
= control target key start
LH: loop header
LB: loop body
LE: loop exit
PB: predicated region body
PF: predicated region fallthrough
CT: control target
= control target key end

     0   :  { %s393_s0 = inlined_call_operand.vmem [shape: f32[8,6], index: 0, kind: input, shape index: {}]   ;;  %s394_s1 = inlined_call_operand.vmem [shape: f32[32,6], index: 1, kind: input, shape index: {}]   ;;  %s395_s2 = inlined_call_operand.vmem [shape: f32[32,1], index: 2, kind: input, shape index: {}]   ;;  %s396_s3 = inlined_call_operand.vmem [shape: f32[32,32], index: 3, kind: input, shape index: {}]   ;;  %s397_s4 = inlined_call_operand.vmem [shape: f32[32,1], index: 4, kind: input, shape index: {}]   ;;  %s398_s5 = inlined_call_operand.vmem [shape: f32[1,32], index: 5, kind: input, shape index: {}]   ;;  %s399_s6 = inlined_call_operand.<no memory space> [shape: f32[1,1], index: 6, kind: input, shape index: {}]   ;;  %s400_s7 = inlined_call_operand.hbm [shape: f32[1,8], index: 7, kind: output, shape index: {}]  }
   0x1   :  { %v12_v0 = vstv %s399_s6 }
   0x2   :  { %13 = vst [vmem:[#allocation2] sm:$0x1] %v12_v0 }
   0x3   :  { %v93_v1 = vld [vmem:[%s393_s0] sm:$0xff]  ;;  %vm94_vm0 = vcmask 48128   ;;  %v41_v2 = vld [vmem:[%s395_s2 + $0x18] sm:$0xff]  ;;  %v280_v4 = vmov 0   ;;  %v39_v5 = vld [vmem:[%s395_s2 + $0x8] sm:$0xff] }
   0x4   :  { %230 = vmatpush.xpose.msk.msra.mxu0 %vm94_vm0, %v93_v1  ;;  %v29_v3 = vld [vmem:[%s394_s1] sm:$0xff]  ;;  %252 = vset.pattern.permute.xlu1 %v280_v4  ;;  %v32_v6 = vld [vmem:[%s394_s1 + $0x18] sm:$0xff] }
   0x5   :  { %251 = vset.pattern.permute.xlu0 %v280_v4  ;;  %49 = vperm.xlu1 %252, %v39_v5  }
   0x6   :  { %59 = vperm.xlu0 %251, %v41_v2   ;;  %240 = vmatpush.xpose.msk.msra.mxu1 %vm94_vm0, %v93_v1 }
   0x7   :  { %14 = vsyncpa [#allocation4], 0  ;;  %231 = vmatmul.msk.f32.vlgmr.msra.gmra.mxu0 %vm94_vm0, %v29_v3  ;;  %253 = vset.pattern.permute.xlu2 %v280_v4  ;;  %v38_v7 = vld [vmem:[%s395_s2] sm:$0xff]  ;;  %v40_v8 = vld [vmem:[%s395_s2 + $0x10] sm:$0xff]  ;;  %vm143_vm1 = vcmask 261120   ;;  %s281_s6 = smov [#allocation3]  }
   0x8   :  { %v30_v9 = vld [vmem:[%s394_s1 + $0x8] sm:$0xff]  ;;  %v62_v10 = vld [vmem:[%s397_s4] sm:$0xff]  ;;  %v31_v12 = vld [vmem:[%s394_s1 + $0x10] sm:$0xff]  ;;  %s219_s0 = sshll.u32 %s281_s6, 4  ;;  %s221_s12 = sshll.u32 %s400_s7, 4  ;;  %vm212_vm2 = vcmask 57344   ;;  %s220_s0 = int_to_ptr.vmem [resolvable:$true] %s219_s0  ;;  %s222_s12 = int_to_ptr.hbm [resolvable:$true] %s221_s12 }
   0x9   :  { %234 = vmatmul.msk.f32.vlgmr.msra.gmra.mxu1 %vm94_vm0, %v32_v6  ;;  %v63_v11 = vld [vmem:[%s397_s4 + $0x8] sm:$0xff]  ;;  %v65_v17 = vld [vmem:[%s397_s4 + $0x18] sm:$0xff]  ;;  %v64_v21 = vld [vmem:[%s397_s4 + $0x10] sm:$0xff] }
   0xa   :  { %83 = vperm.xlu2 %253, %v65_v17   ;;  %v86_v27 = vld [vmem:[#allocation2] sm:$0x1]  ;;  %v34_v33 = vld [vmem:[%s396_s3 + $0x8] sm:$0xff]  ;;  %v35_v34 = vld [vmem:[%s396_s3 + $0x10] sm:$0xff] }
   0xb   :  { %v33_v32 = vld [vmem:[%s396_s3] sm:$0xff]  ;;  %v36_v35 = vld [vmem:[%s396_s3 + $0x18] sm:$0xff] }
   0xc   :  { %v37_v52 = vld [vmem:[%s398_s5] sm:$0x1] }
   0xd   :  { %44 = vperm.xlu1 %252, %v38_v7  }
   0xe   :  { %54 = vperm.xlu0 %251, %v40_v8  }
   0xf   :  { %232 = vmatmul.msk.f32.gmra.mxu0 %vm94_vm0, %v30_v9 }
  0x12   :  { %78 = vperm.xlu2 %253, %v64_v21  }
  0x15   :  { %68 = vperm.xlu1 %252, %v62_v10  }
  0x16   :  { %73 = vperm.xlu0 %251, %v63_v11  }
  0x17   :  { %233 = vmatmul.msk.f32.gmra.mxu0 %vm94_vm0, %v31_v12 }
  0x1a   :  { %89 = vperm.xlu2 %253, %v86_v27  }
  0x64   :  { %v84_v36 = vpop.permute.xlu2 %83 }
  0x6c   :  { %v79_v38 = vpop.permute.xlu2 %78 }
  0x74   :  { %v90_v53 = vpop.permute.xlu2 %89 }
  0x75   :  { %v92_v54 = vperm.slane %v90_v53, 0 }
  0x77   :  { %v50_v18 = vpop.permute.xlu1 %49 }
  0x78   :  { %v60_v14 = vpop.permute.xlu0 %59 }
  0x7f   :  { %v45_v22 = vpop.permute.xlu1 %44 }
  0x80   :  { %v55_v23 = vpop.permute.xlu0 %54 }
  0x84   :  { %v127_v13 = vpop.f32.mrf.mxu0 }
  0x85   :  { %v128_v28 = vadd.f32 %v127_v13, %v45_v22 }
  0x86   :  { %v136_v15 = vpop.f32.mrf.mxu1 }
  0x87   :  { %v137_v16 = vadd.f32 %v136_v15, %v60_v14  ;;  %v139_v31 = vmax.f32 %v128_v28, 0.0  ;;  %v69_v47 = vpop.permute.xlu1 %68 }
  0x88   :  { %v74_v43 = vpop.permute.xlu0 %73 }
  0x89   :  { %v142_v19 = vmax.f32 %v137_v16, 0.0 }
  0x8b   :  { %168 = vmatpush.msrb.mxu1 %v142_v19  ;;  %241 = vmatpush.msra.mxu2 %v142_v19 }
  0x8c   :  { %v130_v20 = vpop.f32.mrf.mxu0  ;;  %242 = vmatpush.msra.mxu3 %v142_v19 }
  0x8d   :  { %v131_v25 = vadd.f32 %v130_v20, %v50_v18 }
  0x8f   :  { %v140_v30 = vmax.f32 %v131_v25, 0.0 }
  0x94   :  { %v133_v24 = vpop.f32.mrf.mxu0 }
  0x95   :  { %v134_v26 = vadd.f32 %v133_v24, %v55_v23 }
  0x97   :  { %v141_v29 = vmax.f32 %v134_v26, 0.0 }
  0x99   :  { %169 = vmatpush.msrb.mxu1 %v141_v29  ;;  %243 = vmatpush.msra.mxu2 %v141_v29 }
  0x9a   :  { %244 = vmatpush.msra.mxu3 %v141_v29 }
  0x9b   :  { %170 = vmatpush.msrb.mxu1 %v140_v30  ;;  %245 = vmatpush.msra.mxu2 %v140_v30 }
  0x9c   :  { %246 = vmatpush.msra.mxu3 %v140_v30 }
  0x9d   :  { %171 = vmatpush.msrb.mxu1 %v139_v31  ;;  %247 = vmatpush.msra.mxu2 %v139_v31 }
  0x9e   :  { %248 = vmatpush.msra.mxu3 %v139_v31  ;;  %235 = vmatmul.msk.f32.vlgmr.msrb.gmra.mxu1 %vm143_vm1, %v33_v32 }
  0x9f   :  { %236 = vmatmul.msk.f32.vlgmr.msra.gmra.mxu2 %vm143_vm1, %v34_v33  ;;  %237 = vmatmul.msk.f32.vlgmr.msra.gmra.mxu3 %vm143_vm1, %v35_v34 }
  0xa7   :  { %238 = vmatmul.msk.f32.gmra.mxu3 %vm143_vm1, %v36_v35 }
 0x11b   :  { %v173_v44 = vpop.f32.mrf.mxu1 }
 0x11c   :  { %v174_v48 = vadd.f32 %v173_v44, %v69_v47 }
 0x11e   :  { %v185_v51 = vmax.f32 %v174_v48, 0.0 }
 0x122   :  { %v179_v37 = vpop.f32.mrf.mxu3  ;;  %v176_v39 = vpop.f32.mrf.mxu2 }
 0x123   :  { %v180_v41 = vadd.f32 %v179_v37, %v79_v38  ;;  %v177_v45 = vadd.f32 %v176_v39, %v74_v43 }
 0x125   :  { %v187_v49 = vmax.f32 %v180_v41, 0.0  ;;  %v186_v50 = vmax.f32 %v177_v45, 0.0 }
 0x12a   :  { %v182_v40 = vpop.f32.mrf.mxu3 }
 0x12b   :  { %v183_v42 = vadd.f32 %v182_v40, %v84_v36 }
 0x12d   :  { %v188_v46 = vmax.f32 %v183_v42, 0.0 }
 0x12f   :  { %204 = vmatpush.msrb.mxu2 %v188_v46 }
 0x131   :  { %205 = vmatpush.msrb.mxu2 %v187_v49 }
 0x133   :  { %206 = vmatpush.msrb.mxu2 %v186_v50 }
 0x135   :  { %207 = vmatpush.msrb.mxu2 %v185_v51 }
 0x136   :  { %239 = vmatmul.msk.f32.vlgmr.msrb.gmra.mxu2 %vm143_vm1, %v37_v52 }
 0x1b9   :  { %v209_v55 = vpop.f32.mrf.mxu2 }
 0x1ba   :  { %v210_v56 = vadd.f32 %v209_v55, %v92_v54 }
 0x1bc   :  { %213 = vst.msk [vmem:[#allocation3] sm:$0x1] %vm212_vm2, %v210_v56 }
 0x1bd   :  { %224 = dma.vmem_to_hbm [thread:$0]  %s220_s0, 16, %s222_s12, [#allocation4]  }
 0x1be   :  { %278 = dma.done.wait [#allocation4], 16  }
 0x1bf   :  { %279 = vsyncadd [#allocation4], 4294967280 }
 0x1c0   :  { %229 = vsyncpa [#allocation4], 1 }

</bundles_post_ra>
